<compile_context>
chip_gen: v7x
topology: tpu7x:2x2x1
jax: 0.10.0
libtpu: 0.0.40
codegen_flags: <defaults>
</compile_context>

<pallas_src>
import functools

import jax
import jax.numpy as jnp
from jax.experimental import pallas as pl
from jax.experimental.pallas import tpu as pltpu

LANE = 128


def _round_up(v, m):
    return (v + m - 1) // m * m


def _vmem_cap_bytes():
    """~80% of physical VMEM (keeps compiler-scratch headroom, esp. on v7x)."""
    try:
        phys = int(pltpu.get_tpu_info().vmem_capacity_bytes)
    except Exception:
        phys = 64 << 20  # assume the smallest generation (v7x: 64 MiB / TC)
    return int(min(phys * 0.8, phys - (8 << 20)))


# ---------------------------------------------------------------------------
# Kernels
# ---------------------------------------------------------------------------
def _agg_project_prelu_kernel(adj_ref, x_ref, w_ref, alpha_ref, out_ref, acc_ref,
                              *, tile_k, resident_x):
    """Aggregate-first path (F <= H): out = PReLU((adj @ x) @ W^T).

    Reduction runs over the adj-column grid axis.  adj tiles are cast to bf16
    in-kernel (so the HBM stream can stay f32 when unpadded).  The f32 VMEM
    accumulator holds adj@x; projection + PReLU run once at finalize with W^T
    resident in VMEM.
    """
    k = pl.program_id(1)

    @pl.when(k == 0)
    def _():
        acc_ref[...] = jnp.zeros_like(acc_ref)

    a = adj_ref[...].astype(jnp.bfloat16)
    if resident_x:
        start = pl.multiple_of(k * tile_k, LANE)
        xs = x_ref[pl.ds(start, tile_k), :]
    else:
        xs = x_ref[...]
    acc_ref[...] += jnp.dot(a, xs, preferred_element_type=jnp.float32)

    @pl.when(k == pl.num_programs(1) - 1)
    def _():
        z = jnp.dot(acc_ref[...].astype(w_ref.dtype), w_ref[...],
                    preferred_element_type=jnp.float32)
        alpha = alpha_ref[0, 0]
        out_ref[...] = jnp.where(z > 0, z, alpha * z).astype(out_ref.dtype)


def _agg_prelu_kernel(adj_ref, y_ref, alpha_ref, out_ref, *, tile_k, resident_y):
    """Project-first path: out = PReLU(adj @ y), y = x @ W^T already computed.

    Accumulates directly into the resident f32 output block (no scratch).
    """
    k = pl.program_id(1)

    @pl.when(k == 0)
    def _():
        out_ref[...] = jnp.zeros_like(out_ref)

    a = adj_ref[...].astype(jnp.bfloat16)
    if resident_y:
        start = pl.multiple_of(k * tile_k, LANE)
        ys = y_ref[pl.ds(start, tile_k), :]
    else:
        ys = y_ref[...]
    out_ref[...] += jnp.dot(a, ys, preferred_element_type=jnp.float32)

    @pl.when(k == pl.num_programs(1) - 1)
    def _():
        z = out_ref[...]
        alpha = alpha_ref[0, 0]
        out_ref[...] = jnp.where(z > 0, z, alpha * z)


def _project_kernel(x_ref, w_ref, out_ref):
    """Row-tiled projection y = x @ W^T (used when H < F: project first)."""
    out_ref[...] = jnp.dot(x_ref[...], w_ref[...],
                           preferred_element_type=jnp.float32).astype(out_ref.dtype)


# ---------------------------------------------------------------------------
# Wrapper
# ---------------------------------------------------------------------------
def gcn_forward(x, adj, w, alpha, *, tile_m=512, tile_k=256):
    """GCN-DGI layer forward: PReLU((adj @ x) @ W^T).

    x:     [N, F]  node features (f32)
    adj:   [N, N]  dense (row-normalized) adjacency (f32)
    w:     [H, F]  nn.Linear(F, H, bias=False) weight (PyTorch layout)
    alpha: scalar / [1,1] PReLU slope (single shared parameter)
    returns [N, H] f32
    """
    N, F = x.shape
    H, F2 = w.shape
    assert F == F2 and adj.shape == (N, N)

    n_aligned = _round_up(N, LANE)
    # Row tile: keep >= 2 parallel row tiles when possible (v7x megacore).
    tm = min(tile_m, max(LANE, (n_aligned // 2) // LANE * LANE))
    # Reduction tile: >= 256 fills v6e/v7x's 256-deep MXU; clamp for tiny N.
    tk = min(tile_k, n_aligned)

    Np_r = _round_up(N, tm)   # adj rows / output rows
    Np_c = _round_up(N, tk)   # adj cols / feature rows
    Fp = _round_up(F, LANE)
    Hp = _round_up(H, LANE)

    # adj: dominant HBM stream.  Avoid a standalone bf16 pre-pass; if padding
    # is unavoidable, fuse pad + cast into one pass emitting bf16, otherwise
    # hand the f32 array straight to the kernel (cast per-tile in-kernel).
    if Np_r != N or Np_c != N:
        adj_p = jnp.pad(adj, ((0, Np_r - N), (0, Np_c - N))).astype(jnp.bfloat16)
    else:
        adj_p = adj
    if Np_c != N or Fp != F:
        x_p = jnp.pad(x, ((0, Np_c - N), (0, Fp - F))).astype(jnp.bfloat16)
    else:
        x_p = x.astype(jnp.bfloat16)
    if Fp != F or Hp != H:
        w_t = jnp.pad(w.T, ((0, Fp - F), (0, Hp - H))).astype(jnp.bfloat16)
    else:
        w_t = w.T.astype(jnp.bfloat16)
    alpha = jnp.asarray(alpha, jnp.float32).reshape(1, 1)

    vmem_cap = _vmem_cap_bytes()
    adj_bpe = jnp.dtype(adj_p.dtype).itemsize
    grid = (Np_r // tm, Np_c // tk)

    def agg_vmem_need(feat_dim, resident, with_w):
        need = 2 * tm * tk * adj_bpe                            # adj tile (dbl-buf)
        need += 2 * (Np_c if resident else tk) * feat_dim * 2   # feature operand
        need += 2 * tm * Hp * 4                                 # f32 output tile
        if with_w:
            need += 2 * Fp * Hp * 2                             # resident W^T
            need += tm * Fp * 4                                 # f32 acc scratch
        return need

    if Fp <= Hp:
        # Aggregate against the smaller feature dim first; project + PReLU at
        # finalize with W^T resident in VMEM.
        resident = agg_vmem_need(Fp, True, True) <= int(vmem_cap * 0.9)
        x_spec = (pl.BlockSpec((Np_c, Fp), lambda i, k: (0, 0)) if resident
                  else pl.BlockSpec((tk, Fp), lambda i, k: (k, 0)))
        out_p = pl.pallas_call(
            functools.partial(_agg_project_prelu_kernel,
                              tile_k=tk, resident_x=resident),
            out_shape=jax.ShapeDtypeStruct((Np_r, Hp), jnp.float32),
            grid=grid,
            in_specs=[
                pl.BlockSpec((tm, tk), lambda i, k: (i, k)),        # adj
                x_spec,                                             # x
                pl.BlockSpec((Fp, Hp), lambda i, k: (0, 0)),        # W^T (resident)
                pl.BlockSpec(memory_space=pltpu.MemorySpace.SMEM),  # alpha
            ],
            out_specs=pl.BlockSpec((tm, Hp), lambda i, k: (i, 0)),
            scratch_shapes=[pltpu.VMEM((tm, Fp), jnp.float32)],
            compiler_params=pltpu.CompilerParams(
                dimension_semantics=("parallel", "arbitrary"),
                vmem_limit_bytes=vmem_cap,
            ),
        )(adj_p, x_p, w_t, alpha)
    else:
        # H < F: project first so the N^2 aggregation contracts over Hp, not Fp.
        tp = LANE
        for cand in (1024, 512, 256):
            if Np_c % cand == 0:
                tp = cand
                break
        y_p = pl.pallas_call(
            _project_kernel,
            out_shape=jax.ShapeDtypeStruct((Np_c, Hp), jnp.bfloat16),
            grid=(Np_c // tp,),
            in_specs=[
                pl.BlockSpec((tp, Fp), lambda i: (i, 0)),
                pl.BlockSpec((Fp, Hp), lambda i: (0, 0)),
            ],
            out_specs=pl.BlockSpec((tp, Hp), lambda i: (i, 0)),
            compiler_params=pltpu.CompilerParams(
                dimension_semantics=("parallel",),
                vmem_limit_bytes=vmem_cap,
            ),
        )(x_p, w_t)

        resident = agg_vmem_need(Hp, True, False) <= int(vmem_cap * 0.9)
        y_spec = (pl.BlockSpec((Np_c, Hp), lambda i, k: (0, 0)) if resident
                  else pl.BlockSpec((tk, Hp), lambda i, k: (k, 0)))
        out_p = pl.pallas_call(
            functools.partial(_agg_prelu_kernel, tile_k=tk, resident_y=resident),
            out_shape=jax.ShapeDtypeStruct((Np_r, Hp), jnp.float32),
            grid=grid,
            in_specs=[
                pl.BlockSpec((tm, tk), lambda i, k: (i, k)),        # adj
                y_spec,                                             # y = x @ W^T
                pl.BlockSpec(memory_space=pltpu.MemorySpace.SMEM),  # alpha
            ],
            out_specs=pl.BlockSpec((tm, Hp), lambda i, k: (i, 0)),
            compiler_params=pltpu.CompilerParams(
                dimension_semantics=("parallel", "arbitrary"),
                vmem_limit_bytes=vmem_cap,
            ),
        )(adj_p, y_p, alpha)

    return out_p[:N, :H]


# ---------------------------------------------------------------------------
# Test harness
# ---------------------------------------------------------------------------
def xavier_uniform(key, fan_in, fan_out, dtype=jnp.float32):
    # Matches torch.nn.init.xavier_uniform_ bound = sqrt(6 / (fan_in + fan_out)).
    bound = (6.0 / (fan_in + fan_out)) ** 0.5
    return jax.random.uniform(key, (fan_out, fan_in), dtype, -bound, bound)


def _reference(x, adj, w, alpha):
    h = jnp.dot(adj, x, precision="highest")
    z = jnp.dot(h, w.T, precision="highest")
    return jnp.where(z > 0, z, alpha * z)


def _make_inputs(key, n, f, h):
    k_x, k_adj, k_w = jax.random.split(key, 3)
    x = jax.random.normal(k_x, (n, f), dtype=jnp.float32)
    raw = jax.random.uniform(k_adj, (n, n), dtype=jnp.float32)
    adj = (raw > 0.9).astype(jnp.float32) + jnp.eye(n, dtype=jnp.float32)
    adj = adj / jnp.sum(adj, axis=1, keepdims=True)   # row-normalized dense spmm stand-in
    w = xavier_uniform(k_w, f, h)                     # [H, F], PyTorch layout
    return x, adj, w


if __name__ == "__main__":
    key = jax.random.PRNGKey(0)
    k1, k2 = jax.random.split(key)
    alpha = jnp.full((1, 1), 0.25, dtype=jnp.float32)  # PReLU default init

    # Case 1: input_dim <= hidden_dim -> fused aggregate-first path (adj stays
    # f32 in HBM because N is tile-aligned; in-kernel bf16 cast).
    x1, adj1, w1 = _make_inputs(k1, 256, 16, 32)
    out1 = jax.block_until_ready(gcn_forward(x1, adj1, w1, alpha))
    ref1 = _reference(x1, adj1, w1, 0.25)
    assert out1.shape == (256, 32)
    assert jnp.allclose(out1, ref1, atol=3e-2, rtol=3e-2), (
        "max abs err = %f" % float(jnp.max(jnp.abs(out1 - ref1))))

    # Case 2: hidden_dim < input_dim -> project-first (reassociated) path,
    # with N not a tile multiple to exercise the fused pad+cast route.
    x2, adj2, w2 = _make_inputs(k2, 192, 256, 64)
    out2 = jax.block_until_ready(gcn_forward(x2, adj2, w2, alpha))
    ref2 = _reference(x2, adj2, w2, 0.25)
    assert out2.shape == (192, 64)
    assert jnp.allclose(out2, ref2, atol=3e-2, rtol=3e-2), (
        "max abs err = %f" % float(jnp.max(jnp.abs(out2 - ref2))))

    print("KERNEL_OK")
</pallas_src>

<mosaic_0001>
module attributes {stable_mosaic.version = 11 : i64} {
  func.func @_agg_project_prelu_kernel(%arg0: i32, %arg1: i32, %arg2: memref<128x256xf32, #tpu.memory_space<vmem>>, %arg3: memref<256x128xbf16, #tpu.memory_space<vmem>>, %arg4: memref<128x128xbf16, #tpu.memory_space<vmem>>, %arg5: memref<1x1xf32, #tpu.memory_space<smem>>, %arg6: memref<128x128xf32, #tpu.memory_space<vmem>>, %arg7: memref<128x128xf32, #tpu.memory_space<vmem>>) attributes {dimension_semantics = [#tpu.dimension_semantics<parallel>, #tpu.dimension_semantics<arbitrary>], iteration_bounds = array<i64: 2, 1>, scalar_prefetch = 0 : i64, scratch_operands = 1 : i64, tpu.core_type = #tpu.core_type<tc>, window_params = [{transform_indices = @transform_0, window_bounds = array<i64: 128, 256>}, {pipeline_mode = #tpu.pipeline_mode<synchronous>, transform_indices = @transform_1, window_bounds = array<i64: 256, 128>}, {pipeline_mode = #tpu.pipeline_mode<synchronous>, transform_indices = @transform_2, window_bounds = array<i64: 128, 128>}, {transform_indices = @transform_3, window_bounds = array<i64: 1, 1>}, {transform_indices = @transform_4, window_bounds = array<i64: 128, 128>}]} {
    %c0_i32 = arith.constant 0 : i32
    %0 = arith.cmpi eq, %arg1, %c0_i32 : i32
    %1 = arith.extui %0 : i1 to i32
    %c0_i32_0 = arith.constant 0 : i32
    %2 = arith.cmpi ne, %1, %c0_i32_0 : i32
    scf.if %2 {
      %cst_9 = arith.constant 0.000000e+00 : f32
      %16 = vector.broadcast %cst_9 : f32 to vector<128x128xf32>
      %c0_10 = arith.constant 0 : index
      %c0_11 = arith.constant 0 : index
      %17 = vector.load %arg7[%c0_10, %c0_11] : memref<128x128xf32, #tpu.memory_space<vmem>>, vector<128x128xf32>
      tpu.vector_store %arg7[%c0_10, %c0_11], %16 {strides = array<i32>} : memref<128x128xf32, #tpu.memory_space<vmem>>, vector<128x128xf32>,
    } else {
    }
    %c0 = arith.constant 0 : index
    %c0_1 = arith.constant 0 : index
    %3 = vector.load %arg2[%c0, %c0_1] : memref<128x256xf32, #tpu.memory_space<vmem>>, vector<128x256xf32>
    %4 = arith.truncf %3 : vector<128x256xf32> to vector<128x256xbf16>
    %c256_i32 = arith.constant 256 : i32
    %5 = arith.muli %arg1, %c256_i32 : i32
    %6 = tpu.assume_multiple %5, 128 : i32
    %7 = arith.index_cast %6 : i32 to index
    %c0_2 = arith.constant 0 : index
    %8 = vector.load %arg3[%7, %c0_2] : memref<256x128xbf16, #tpu.memory_space<vmem>>, vector<256x128xbf16>
    %c0_3 = arith.constant 0 : index
    %c0_4 = arith.constant 0 : index
    %9 = vector.load %arg7[%c0_3, %c0_4] : memref<128x128xf32, #tpu.memory_space<vmem>>, vector<128x128xf32>
    %cst = arith.constant dense<0.000000e+00> : vector<128x128xf32>
    %10 = tpu.matmul %4, %8, %cst {dimension_numbers = #tpu.dot_dimension_numbers<[1], [0], [0], [1], [0, 0, 1, 1], [], []>} : vector<128x256xbf16>, vector<256x128xbf16>, vector<128x128xf32> -> vector<128x128xf32>
    %11 = arith.addf %9, %10 : vector<128x128xf32>
    %c0_5 = arith.constant 0 : index
    %c0_6 = arith.constant 0 : index
    %12 = vector.load %arg7[%c0_5, %c0_6] : memref<128x128xf32, #tpu.memory_space<vmem>>, vector<128x128xf32>
    tpu.vector_store %arg7[%c0_5, %c0_6], %11 {strides = array<i32>} : memref<128x128xf32, #tpu.memory_space<vmem>>, vector<128x128xf32>,
    %c0_i32_7 = arith.constant 0 : i32
    %13 = arith.cmpi eq, %arg1, %c0_i32_7 : i32
    %14 = arith.extui %13 : i1 to i32
    %c0_i32_8 = arith.constant 0 : i32
    %15 = arith.cmpi ne, %14, %c0_i32_8 : i32
    scf.if %15 {
      %c0_9 = arith.constant 0 : index
      %c0_10 = arith.constant 0 : index
      %16 = vector.load %arg7[%c0_9, %c0_10] : memref<128x128xf32, #tpu.memory_space<vmem>>, vector<128x128xf32>
      %17 = arith.truncf %16 : vector<128x128xf32> to vector<128x128xbf16>
      %c0_11 = arith.constant 0 : index
      %c0_12 = arith.constant 0 : index
      %18 = vector.load %arg4[%c0_11, %c0_12] : memref<128x128xbf16, #tpu.memory_space<vmem>>, vector<128x128xbf16>
      %cst_13 = arith.constant dense<0.000000e+00> : vector<128x128xf32>
      %19 = tpu.matmul %17, %18, %cst_13 {dimension_numbers = #tpu.dot_dimension_numbers<[1], [0], [0], [1], [0, 0, 1, 1], [], []>} : vector<128x128xbf16>, vector<128x128xbf16>, vector<128x128xf32> -> vector<128x128xf32>
      %c0_14 = arith.constant 0 : index
      %c0_15 = arith.constant 0 : index
      %20 = memref.load %arg5[%c0_14, %c0_15] : memref<1x1xf32, #tpu.memory_space<smem>>
      %cst_16 = arith.constant 0.000000e+00 : f32
      %21 = vector.broadcast %cst_16 : f32 to vector<128x128xf32>
      %22 = arith.cmpf ogt, %19, %21 : vector<128x128xf32>
      %23 = vector.broadcast %20 : f32 to vector<128x128xf32>
      %24 = arith.mulf %23, %19 : vector<128x128xf32>
      %25 = arith.select %22, %19, %24 : vector<128x128xi1>, vector<128x128xf32>
      %c0_17 = arith.constant 0 : index
      %c0_18 = arith.constant 0 : index
      %26 = vector.load %arg6[%c0_17, %c0_18] : memref<128x128xf32, #tpu.memory_space<vmem>>, vector<128x128xf32>
      tpu.vector_store %arg6[%c0_17, %c0_18], %25 {strides = array<i32>} : memref<128x128xf32, #tpu.memory_space<vmem>>, vector<128x128xf32>,
    } else {
    }
    return
  }
  func.func @transform_0(%arg0: i32, %arg1: i32) -> (i32, i32) {
    %c0_i32 = arith.constant 0 : i32
    return %arg0, %arg1 : i32, i32
  }
  func.func @transform_1(%arg0: i32, %arg1: i32) -> (i32, i32) {
    %c0_i32 = arith.constant 0 : i32
    %c0_i32_0 = arith.constant 0 : i32
    %c0_i32_1 = arith.constant 0 : i32
    return %c0_i32, %c0_i32_0 : i32, i32
  }
  func.func @transform_2(%arg0: i32, %arg1: i32) -> (i32, i32) {
    %c0_i32 = arith.constant 0 : i32
    %c0_i32_0 = arith.constant 0 : i32
    %c0_i32_1 = arith.constant 0 : i32
    return %c0_i32, %c0_i32_0 : i32, i32
  }
  func.func @transform_3(%arg0: i32, %arg1: i32) -> (i32, i32) {
    %c0_i32 = arith.constant 0 : i32
    %c0_i32_0 = arith.constant 0 : i32
    %c0_i32_1 = arith.constant 0 : i32
    return %c0_i32, %c0_i32_0 : i32, i32
  }
  func.func @transform_4(%arg0: i32, %arg1: i32) -> (i32, i32) {
    %c0_i32 = arith.constant 0 : i32
    %c0_i32_0 = arith.constant 0 : i32
    return %arg0, %c0_i32 : i32, i32
  }
}

</mosaic_0001>

<bundles_post_ra>
// kernel: tpu_custom_call.1
= control target key start
LH: loop header
LB: loop body
LE: loop exit
PB: predicated region body
PF: predicated region fallthrough
CT: control target
= control target key end

     0   :  { %s1797_s0 = inlined_call_operand.hbm [shape: f32[256,256], index: 0, kind: input, shape index: {}]   ;;  %s1798_s1 = inlined_call_operand.hbm [shape: bf16[256,128], index: 1, kind: input, shape index: {}]   ;;  %s1799_s2 = inlined_call_operand.hbm [shape: bf16[128,128], index: 2, kind: input, shape index: {}]   ;;  %s1800_s3 = inlined_call_operand.<no memory space> [shape: f32[1,1], index: 3, kind: input, shape index: {}]   ;;  %s1801_s4 = inlined_call_operand.hbm [shape: f32[256,128], index: 4, kind: output, shape index: {}]  }
   0x1   :  { %9 = sst [smem:[#allocation3]] %s1800_s3 }
   0x2   :  { %10 = vsyncpa [#allocation5], 0 }
   0x3   :  { %12 = vsyncpa [#allocation5 + $0x1], 0 }
   0x4   :  { %13 = vsyncpa [#allocation8], 0 }
   0x5   :  { %14 = vsyncpa [#allocation6], 0 }
   0x6   :  { %16 = vsyncpa [#allocation6 + $0x1], 0  ;;  %s1470_s17 = smov 0   ;;  %s1472_s18 = smov 0  }
   0x7   :  { %s1474_s19 = smov 0   ;;  %s1476_s20 = smov 0  }
   0x8   :  { %s1478_s21 = smov 0   ;;  %s1480_s22 = smov 0  }
   0x9 LB: > { %s986_s3 = sadd.s32 4294967295, %s1430_s22   ;;  %s987_s23 = sadd.s32 4294967294, %s1430_s22   ;;  %s1430_s22 = sphi %s1480_s22, %s22_s22   ;;  %s1426_s21 = sphi %s1478_s21, %s1823_s21   ;;  %s1422_s20 = sphi %s1476_s20, %s1822_s20   ;;  %s1418_s19 = sphi %s1474_s19, %s1821_s19   ;;  %s1414_s18 = sphi %s1472_s18, %s1820_s18   ;;  %s1410_s17 = sphi %s1470_s17, %s1819_s17  }
   0xa   : > { %p56_p0 = scmp.ne.s32.totalorder %s1414_s18, %s1410_s17  ;;  %p1504_p1 = scmp.eq.s32.totalorder %s986_s3, 0 }
   0xb   : > { %p1508_p2 = scmp.eq.s32.totalorder %s986_s3, 1  ;;  %p149_p3 = scmp.eq.s32.totalorder %s987_s23, 1 }
   0xc   : > { %s1806_s24 = scalar_select %p1504_p1, 1, 0 }
   0xd   : > { %p1514_p4 = por %p1504_p1, %p56_p0  ;;  %p988_p5 = scmp.ge.s32.totalorder %s1430_s22, 1 }
   0xe   : > { %p1519_p6 = por %p149_p3, %p56_p0  ;;  %p156_p7 = scmp.lt.s32.totalorder %s1430_s22, 3 }
   0xf   : > { %s1808_s26 = scalar_select %p1514_p4, 1, 0 }
  0x10   : > { %s1809_s27 = scalar_select %p1519_p6, 1, 0 }
  0x11   : > { %p1524_p8 = pnand %p988_p5, %p156_p7  ;;  %s1432_s29 = smov [#allocation7]  }
  0x12   : > { %s168_s30 = sshll.u32 %s1432_s29, 4  ;;  %s1433_s6 = smov [#allocation9]   ;;  %s1528_s30 = int_to_ptr.vmem [resolvable:$true] %s168_s30 }
  0x13   : > { %p1157_p9 = pneg %p1524_p8  ;;  %s181_s7 = sshll.u32 %s1433_s6, 4  ;;  %s1539_s7 = int_to_ptr.vmem [resolvable:$true] %s181_s7 }
  0x14   : > { %s1258_s10 = scalar_lea.hbm %s1798_s1, 2048 }
  0x15   : > { %p1535_p11 = pnand %p1157_p9, %p1504_p1  ;;  %p1259_p12 = scmp.ne.s32.totalorder %s1798_s1, %s1258_s10 }
  0x16   : > { %p1265_p5 = scmp.lt.u32.totalorder %s1258_s10, %s1798_s1 }
  0x17   : > { %p1260_p13 = pneg %p1535_p11 }
  0x19   : > { %p1261_p0 = pnand %p1260_p13, %p1259_p12 }
  0x1b   : > { %p1262_p3 = pneg %p1261_p0 }
  0x1d   : > { %p1267_p7 = pnand %p1265_p5, %p1262_p3 }
  0x1f   : > { %1270 = shalt.err (!%p1267_p7)
}
  0x20   : > { %s1271_s15 = scalar_lea.vmem %s1528_s30, 2048  ;;  %p1279_p1 = scmp.lt.s32.totalorder %s1528_s30, %s1528_s30 }
  0x21   : > { %p1272_p9 = scmp.ne.s32.totalorder %s1528_s30, %s1271_s15  ;;  %p1280_p12 = scmp.lt.s32.totalorder %s1271_s15, %s1271_s15 }
  0x23   : > { %p1274_p10 = pnand %p1272_p9, %p1260_p13  ;;  %p1281_p0 = por %p1280_p12, %p1279_p1 }
  0x25   : > { %p1275_p6 = pneg %p1274_p10 }
  0x27   : > { %p1282_p4 = pnand %p1281_p0, %p1275_p6 }
  0x29   : > { %1285 = shalt.err (!%p1282_p4)
}
  0x2a   : > { %s1434_s16 = smov 64   ;;  %s1435_s3 = smov 4  }
  0x2b   : > { %1160 = dma.hbm_to_vmem [thread:$0]  (!%p1535_p11), %s1798_s1, 2048, %s1528_s30, [#allocation8], %s1434_s16, %s1434_s16, %s1435_s3  }
  0x2c   : > { %s1286_s9 = scalar_lea.hbm %s1799_s2, 1024 }
  0x2d   : > { %p1287_p1 = scmp.ne.s32.totalorder %s1799_s2, %s1286_s9  ;;  %p1293_p10 = scmp.lt.u32.totalorder %s1286_s9, %s1799_s2 }
  0x2f   : > { %p1289_p4 = pnand %p1287_p1, %p1260_p13 }
  0x31   : > { %p1290_p6 = pneg %p1289_p4 }
  0x33   : > { %p1295_p3 = pnand %p1293_p10, %p1290_p6 }
  0x35   : > { %1298 = shalt.err (!%p1295_p3)
}
  0x36   : > { %s1299_s30 = scalar_lea.vmem %s1539_s7, 1024  ;;  %p1307_p12 = scmp.lt.s32.totalorder %s1539_s7, %s1539_s7 }
  0x37   : > { %p1300_p5 = scmp.ne.s32.totalorder %s1539_s7, %s1299_s30  ;;  %p1308_p0 = scmp.lt.s32.totalorder %s1299_s30, %s1299_s30 }
  0x39   : > { %p1302_p7 = pnand %p1300_p5, %p1260_p13  ;;  %p1309_p1 = por %p1308_p0, %p1307_p12 }
  0x3b   : > { %p1303_p9 = pneg %p1302_p7 }
  0x3d   : > { %p1310_p4 = pnand %p1309_p1, %p1303_p9 }
  0x3f   : > { %1313 = shalt.err (!%p1310_p4)
}
  0x40   : > { %1163 = dma.hbm_to_vmem [thread:$0]  (!%p1535_p11), %s1799_s2, 1024, %s1539_s7, [#allocation8], %s1434_s16, %s1434_s16, %s1435_s3  }
  0x41   : > { %s34_s23 = sadd.s32 1, %s1426_s21  ;;  %s43_s29 = sadd.s32 1, %s1418_s19 }
  0x42   : > { %p36_p13 = scmp.ge.s32.totalorder %s34_s23, 2  ;;  %p50_p6 = scmp.ne.s32.totalorder %s1418_s19, %s1414_s18 }
  0x43   : > { %p51_p10 = scmp.eq.s32.totalorder %s1430_s22, 0  ;;  %p1174_p3 = scmp.lt.s32.totalorder %s1430_s22, 2 }
  0x44   : > { %s1825_s23 = smov (%p36_p13, %s34_s23), 0  ;;  %p1603_p7 = por %p1508_p2, %p50_p6 }
  0x45   : > { %p52_p5 = por %p51_p10, %p50_p6  ;;  %s38_s6 = ssub.s32 %s1426_s21, %s1825_s23 }
  0x46   : > { %s1812_s5 = scalar_select %p1603_p7, 1, 0 }
  0x47   : > { %s198_s8 = sand.u32 1, %s1418_s19   ;;  %p41_p9 = scmp.eq.s32.totalorder %s38_s6, 0 }
  0x48   : > { %s992_s7 = sshll.u32 %s198_s8, 8  ;;  %s1031_s16 = sshll.u32 %s1426_s21, 12 }
  0x49   : > { %s1612_s3 = scalar_select %p41_p9, %s1418_s19, %s43_s29  }
  0x4a   : > { %s1617_s11 = scalar_lea.hbm %s1797_s0, %s1031_s16  ;;  %s202_s25 = scalar_lea.vmem [#allocation4], %s992_s7 }
  0x4b   : > { %s212_s12 = sshll.u32 %s202_s25, 4  ;;  %p1621_p2 = pnand %p1174_p3, %p52_p5  ;;  %s1625_s12 = int_to_ptr.vmem [resolvable:$true] %s212_s12 }
  0x4c   : > { %s1627_s30 = scalar_lea.sflag [#allocation5], %s198_s8  ;;  %s1314_s14 = scalar_lea.hbm %s1617_s11, 4096 }
  0x4d   : > { %p1315_p11 = scmp.ne.s32.totalorder %s1617_s11, %s1314_s14  ;;  %p1316_p12 = pneg %p1621_p2 }
  0x4e   : > { %s1319_s6 = scalar_lea.hbm %s1797_s0, 8192  ;;  %p1320_p4 = scmp.lt.u32.totalorder %s1617_s11, %s1797_s0 }
  0x4f   : > { %p1317_p0 = pnand %p1316_p12, %p1315_p11  ;;  %p1321_p13 = scmp.lt.u32.totalorder %s1319_s6, %s1314_s14 }
  0x50   : > { %p1323_p10 = scmp.lt.u32.totalorder %s1314_s14, %s1617_s11 }
  0x51   : > { %p1318_p1 = pneg %p1317_p0  ;;  %p1322_p6 = por %p1321_p13, %p1320_p4 }
  0x53   : > { %p1324_p3 = por %p1323_p10, %p1322_p6 }
  0x55   : > { %p1325_p5 = pnand %p1324_p3, %p1318_p1 }
  0x57   : > { %1328 = shalt.err (!%p1325_p5)
}
  0x58   : > { %s1329_s8 = scalar_lea.vmem %s1625_s12, 4096  ;;  %s1436_s9 = smov [#allocation4]  }
  0x59   : > { %p1330_p9 = scmp.ne.s32.totalorder %s1625_s12, %s1329_s8  ;;  %s1334_s10 = sshll.u32 %s1436_s9, 4  ;;  %s1335_s10 = int_to_ptr.vmem [resolvable:$false] %s1334_s10 }
  0x5a   : > { %s1336_s25 = scalar_lea.vmem %s1335_s10, 8192  ;;  %p1337_p7 = scmp.lt.s32.totalorder %s1625_s12, %s1335_s10 }
  0x5b   : > { %p1332_p11 = pnand %p1330_p9, %p1316_p12  ;;  %p1338_p4 = scmp.lt.s32.totalorder %s1336_s25, %s1329_s8 }
  0x5d   : > { %p1333_p0 = pneg %p1332_p11  ;;  %p1339_p13 = por %p1338_p4, %p1337_p7 }
  0x5f   : > { %p1340_p6 = pnand %p1339_p13, %p1333_p0 }
  0x61   : > { %1343 = shalt.err (!%p1340_p6)
}
  0x62   : > { %s1437_s14 = smov 256   ;;  %s1438_s15 = smov 16  }
  0x63   : > { %1167 = dma.hbm_to_vmem [thread:$0]  (!%p1621_p2), %s1617_s11, 4096, %s1625_s12, %s1627_s30, %s1437_s14, %s1437_s14, %s1438_s15  }
  0x64   : > { %224 = sbr.rel (%p1524_p8) target bundleno = 652 (0x28c), region = 36  ;;  %s1658_s29 = sand.u32 (!%p1524_p8), 1, %s1414_s18  }
  0x65   : > { %s997_s6 = sshll.u32 (!%p1524_p8), %s1658_s29, 8  ;;  %s227_s7 = scalar_lea.sflag (!%p1524_p8), [#allocation5], %s1658_s29 }
  0x66   : > { %s1662_s16 = scalar_lea.vmem (!%p1524_p8), [#allocation4], %s997_s6  ;;  %p1814_p7 = scmp.ne.s32.totalorder (!%p1524_p8), %s1808_s26, 0 }
  0x6b   : > { %1397 = dma.done.wait (%p1814_p7), %s227_s7, 4096  }
  0x6c   : > { %1399 = vsyncadd (%p1814_p7), %s227_s7, 4294963200  ;;  %p1815_p2 = scmp.ne.s32.totalorder %s1806_s24, 0 }
  0x6e   : > { %1401 = dma.done.wait (%p1815_p2), [#allocation8], 3072  }
  0x6f   : > { %1403 = vsyncadd (%p1815_p2), [#allocation8], 4294964224  ;;  %v1234_v0 = vld [vmem:[#allocation7 + $0x40] sm:$0xff]   ;;  %v1236_v2 = vld [vmem:[#allocation7 + $0x48] sm:$0xff]   ;;  %s801_s24 = sld [smem:[#allocation3]]  ;;  %s1000_s26 = sshll.u32 %s1658_s29, 7 }
  0x70   : > { %v1235_v1 = vld [vmem:[#allocation7] sm:$0xff]   ;;  %1033 = vmatprep.subr.bf16.mxu0 %v1234_v0  ;;  %v1237_v3 = vld [vmem:[#allocation7 + $0x8] sm:$0xff]   ;;  %v1238_v4 = vld [vmem:[#allocation7 + $0x50] sm:$0xff]   ;;  %s1710_s28 = scalar_lea.vmem [#allocation10], %s1000_s26  ;;  %s1032_s11 = sshll.u32 %s1422_s20, 11 }
  0x71   : > { %1034 = vmatpush3.bf16.msra.mxu0 %v1235_v1  ;;  %v1239_v5 = vld [vmem:[#allocation7 + $0x10] sm:$0xff]   ;;  %v1240_v6 = vld [vmem:[#allocation7 + $0x58] sm:$0xff]   ;;  %v1242_v8 = vld [vmem:[#allocation7 + $0x60] sm:$0xff]   ;;  %s881_s12 = sshll.u32 %s1710_s28, 4  ;;  %s1743_s30 = scalar_lea.hbm %s1801_s4, %s1032_s11  ;;  %s1745_s12 = int_to_ptr.vmem [resolvable:$true] %s881_s12 }
  0x72   : > { %1035 = vmatprep.subr.bf16.mxu0 %v1236_v2  ;;  %v1241_v7 = vld [vmem:[#allocation7 + $0x18] sm:$0xff]   ;;  %v1243_v9 = vld [vmem:[#allocation7 + $0x20] sm:$0xff]   ;;  %v1244_v10 = vld [vmem:[#allocation7 + $0x68] sm:$0xff]   ;;  %s868_s8 = scalar_lea.sflag [#allocation6], %s1658_s29  ;;  %s1344_s9 = scalar_lea.vmem %s1745_s12, 2048 }
  0x73   : > { %v288_v11 = vld [vmem:[%s1662_s16 + $0x8] sm:$0xff]  ;;  %v290_v12 = vld [vmem:[%s1662_s16 + $0x18] sm:$0xff]  ;;  %v1246_v15 = vld [vmem:[#allocation7 + $0x70] sm:$0xff]   ;;  %p1345_p8 = scmp.ne.s32.totalorder %s1745_s12, %s1344_s9  ;;  %p1816_p12 = scmp.ne.s32.totalorder %s1812_s5, 0 }
  0x74   : > { %v320_v13 = vpack.c.bf16 %v290_v12, %v288_v11  ;;  %v1245_v14 = vld [vmem:[#allocation7 + $0x28] sm:$0xff]   ;;  %v1247_v16 = vld [vmem:[#allocation7 + $0x30] sm:$0xff]   ;;  %v1248_v17 = vld [vmem:[#allocation7 + $0x78] sm:$0xff]   ;;  %s1439_s10 = smov [#allocation10]  }
  0x75   : > { %1036 = vmatpush3.bf16.msra.mxu0 %v1237_v3  ;;  %v1249_v18 = vld [vmem:[#allocation7 + $0x38] sm:$0xff]   ;;  %v287_v19 = vld [vmem:[%s1662_s16] sm:$0xff]  ;;  %v289_v20 = vld [vmem:[%s1662_s16 + $0x10] sm:$0xff]  ;;  %p1346_p1 = pnand %p1345_p8, %p1816_p12  ;;  %s1348_s25 = sshll.u32 %s1439_s10, 4  ;;  %s1349_s25 = int_to_ptr.vmem [resolvable:$false] %s1348_s25 }
  0x76   : > { %1037 = vmatprep.subr.bf16.mxu0 %v1238_v4  ;;  %516 = vmatprep.mubr.bf16.mxu0 %v320_v13  ;;  %v292_v21 = vld [vmem:[%s1662_s16 + $0x28] sm:$0xff]  ;;  %v294_v22 = vld [vmem:[%s1662_s16 + $0x38] sm:$0xff]  ;;  %v1250_v23 = vld [vmem:[#allocation9] sm:$0xff]   ;;  %v319_v25 = vpack.c.bf16 %v289_v20, %v287_v19  ;;  %s1350_s14 = scalar_lea.vmem %s1349_s25, 4096  ;;  %p1351_p3 = scmp.lt.s32.totalorder %s1745_s12, %s1349_s25 }
  0x77   : > { %v1251_v24 = vld [vmem:[#allocation9 + $0x8] sm:$0xff]   ;;  %1113 = vmatprep.subr.bf16.mxu1 %v1250_v23  ;;  %v1252_v26 = vld [vmem:[#allocation9 + $0x10] sm:$0xff]   ;;  %v322_v27 = vpack.c.bf16 %v294_v22, %v292_v21  ;;  %v291_v28 = vld [vmem:[%s1662_s16 + $0x20] sm:$0xff]  ;;  %p1347_p10 = pneg %p1346_p1  ;;  %p1352_p5 = scmp.lt.s32.totalorder %s1350_s14, %s1344_s9 }
  0x78   : > { %1114 = vmatpush3.bf16.msra.mxu1 %v1250_v23  ;;  %v293_v29 = vld [vmem:[%s1662_s16 + $0x30] sm:$0xff]  ;;  %v1253_v30 = vld [vmem:[#allocation9 + $0x18] sm:$0xff]   ;;  %v296_v31 = vld [vmem:[%s1662_s16 + $0x48] sm:$0xff] }
  0x79   : > { %1038 = vmatpush3.bf16.msra.mxu0 %v1239_v5  ;;  %1115 = vmatprep.subr.bf16.mxu1 %v1251_v24  ;;  %v298_v32 = vld [vmem:[%s1662_s16 + $0x58] sm:$0xff]  ;;  %v321_v33 = vpack.c.bf16 %v293_v29, %v291_v28  ;;  %v295_v35 = vld [vmem:[%s1662_s16 + $0x40] sm:$0xff]  ;;  %v297_v36 = vld [vmem:[%s1662_s16 + $0x50] sm:$0xff]  ;;  %p1353_p9 = por %p1352_p5, %p1351_p3 }
  0x7a   : > { %1039 = vmatprep.subr.bf16.mxu0 %v1240_v6  ;;  %v324_v34 = vpack.c.bf16 %v298_v32, %v296_v31  ;;  %v300_v37 = vld [vmem:[%s1662_s16 + $0x68] sm:$0xff]  ;;  %v302_v38 = vld [vmem:[%s1662_s16 + $0x78] sm:$0xff]  ;;  %v323_v39 = vpack.c.bf16 %v297_v36, %v295_v35  ;;  %v299_v41 = vld [vmem:[%s1662_s16 + $0x60] sm:$0xff] }
  0x7b   : > { %v326_v40 = vpack.c.bf16 %v302_v38, %v300_v37  ;;  %v301_v42 = vld [vmem:[%s1662_s16 + $0x70] sm:$0xff]  ;;  %v304_v43 = vld [vmem:[%s1662_s16 + $0x88] sm:$0xff]  ;;  %v306_v44 = vld [vmem:[%s1662_s16 + $0x98] sm:$0xff]  ;;  %p1354_p11 = pnand %p1353_p9, %p1347_p10 }
  0x7c   : > { %1116 = vmatpush3.bf16.msra.mxu1 %v1251_v24  ;;  %v325_v45 = vpack.c.bf16 %v301_v42, %v299_v41  ;;  %v328_v46 = vpack.c.bf16 %v306_v44, %v304_v43  ;;  %v303_v47 = vld [vmem:[%s1662_s16 + $0x80] sm:$0xff]  ;;  %v305_v48 = vld [vmem:[%s1662_s16 + $0x90] sm:$0xff]  ;;  %v308_v49 = vld [vmem:[%s1662_s16 + $0xa8] sm:$0xff] }
  0x7d   : > { %1040 = vmatpush3.bf16.msra.mxu0 %v1241_v7  ;;  %1117 = vmatprep.subr.bf16.mxu1 %v1252_v26  ;;  %v310_v50 = vld [vmem:[%s1662_s16 + $0xb8] sm:$0xff]  ;;  %v327_v51 = vpack.c.bf16 %v305_v48, %v303_v47  ;;  %v307_v53 = vld [vmem:[%s1662_s16 + $0xa0] sm:$0xff]  ;;  %v309_v54 = vld [vmem:[%s1662_s16 + $0xb0] sm:$0xff] }
  0x7e   : > { %1041 = vmatprep.subr.bf16.mxu0 %v1242_v8  ;;  %v330_v52 = vpack.c.bf16 %v310_v50, %v308_v49  ;;  %v312_v55 = vld [vmem:[%s1662_s16 + $0xc8] sm:$0xff]  ;;  %v314_v56 = vld [vmem:[%s1662_s16 + $0xd8] sm:$0xff]  ;;  %v329_v57 = vpack.c.bf16 %v309_v54, %v307_v53  ;;  %v311_v59 = vld [vmem:[%s1662_s16 + $0xc0] sm:$0xff] }
  0x7f   : > { %v332_v58 = vpack.c.bf16 %v314_v56, %v312_v55  ;;  %v313_v60 = vld [vmem:[%s1662_s16 + $0xd0] sm:$0xff]  ;;  %v316_v61 = vld [vmem:[%s1662_s16 + $0xe8] sm:$0xff]  ;;  %v318_v62 = vld [vmem:[%s1662_s16 + $0xf8] sm:$0xff] }
  0x80   : > { %1118 = vmatpush3.bf16.msra.mxu1 %v1252_v26  ;;  %v331_v63 = vpack.c.bf16 %v313_v60, %v311_v59  ;;  %v334_v0 = vpack.c.bf16 %v318_v62, %v316_v61  ;;  %v315_v1 = vld [vmem:[%s1662_s16 + $0xe0] sm:$0xff]  ;;  %v317_v2 = vld [vmem:[%s1662_s16 + $0xf0] sm:$0xff]  ;;  %v1255_v5 = vld [vmem:[#allocation9 + $0x28] sm:$0xff]  }
  0x81   : > { %1042 = vmatpush3.bf16.msra.mxu0 %v1243_v9  ;;  %1119 = vmatprep.subr.bf16.mxu1 %v1253_v30  ;;  %v333_v3 = vpack.c.bf16 %v317_v2, %v315_v1  ;;  %v1254_v4 = vld [vmem:[#allocation9 + $0x20] sm:$0xff]   ;;  %v1256_v6 = vld [vmem:[#allocation9 + $0x30] sm:$0xff]   ;;  %v1257_v7 = vld [vmem:[#allocation9 + $0x38] sm:$0xff]  }
  0x82   : > { %1043 = vmatprep.subr.bf16.mxu0 %v1244_v10 }
  0x84   : > { %1120 = vmatpush3.bf16.msra.mxu1 %v1253_v30 }
  0x85   : > { %1044 = vmatpush3.bf16.msra.mxu0 %v1245_v14  ;;  %1121 = vmatprep.subr.bf16.mxu1 %v1254_v4 }
  0x86   : > { %1045 = vmatprep.subr.bf16.mxu0 %v1246_v15 }
  0x88   : > { %1122 = vmatpush3.bf16.msra.mxu1 %v1254_v4 }
  0x89   : > { %1046 = vmatpush3.bf16.msra.mxu0 %v1247_v16  ;;  %1123 = vmatprep.subr.bf16.mxu1 %v1255_v5 }
  0x8a   : > { %1047 = vmatprep.subr.bf16.mxu0 %v1248_v17 }
  0x8c   : > { %1124 = vmatpush3.bf16.msra.mxu1 %v1255_v5 }
  0x8d   : > { %1048 = vmatpush3.bf16.msra.mxu0 %v1249_v18  ;;  %1125 = vmatprep.subr.bf16.mxu1 %v1256_v6 }
  0x90   : > { %517 = vmatmul.mubr.bf16.vlgmr.msra.gmra.mrb[0].mxu0 %v319_v25  ;;  %1126 = vmatpush3.bf16.msra.mxu1 %v1256_v6 }
  0x91   : > { %524 = vmatprep.mubr.bf16.mxu0 %v322_v27  ;;  %1127 = vmatprep.subr.bf16.mxu1 %v1257_v7 }
  0x94   : > { %1128 = vmatpush3.bf16.msra.mxu1 %v1257_v7 }
  0x98   : > { %525 = vmatmul.mubr.bf16.gmra.mrb[4].mxu0 %v321_v33 }
  0x99   : > { %532 = vmatprep.mubr.bf16.mxu0 %v324_v34 }
  0xa0   : > { %533 = vmatmul.mubr.bf16.gmra.mrb[8].mxu0 %v323_v39 }
  0xa1   : > { %540 = vmatprep.mubr.bf16.mxu0 %v326_v40 }
  0xa8   : > { %541 = vmatmul.mubr.bf16.gmra.mrb[12].mxu0 %v325_v45 }
  0xa9   : > { %548 = vmatprep.mubr.bf16.mxu0 %v328_v46 }
  0xb0   : > { %549 = vmatmul.mubr.bf16.gmra.mrb[16].mxu0 %v327_v51 }
  0xb1   : > { %556 = vmatprep.mubr.bf16.mxu0 %v330_v52 }
  0xb8   : > { %557 = vmatmul.mubr.bf16.gmra.mrb[20].mxu0 %v329_v57 }
  0xb9   : > { %564 = vmatprep.mubr.bf16.mxu0 %v332_v58 }
  0xc0   : > { %565 = vmatmul.mubr.bf16.gmra.mrb[24].mxu0 %v331_v63 }
  0xc1   : > { %572 = vmatprep.mubr.bf16.mxu0 %v334_v0  ;;  %v1705_v0 = vstv %s801_s24 }
  0xc8   : > { %573 = vmatmul.mubr.bf16.gmra.mrb[28].mxu0 %v333_v3 }
 0x163   : > { %v1049_v8 = vpop.f32.mrb[0].mxu0 }
 0x164   : > { %v1050_v9 = vpop.f32.mrb[1].mxu0 }
 0x165   : > { %v1051_v10 = vadd.f32 %v1050_v9, %v1049_v8  ;;  %v1052_v11 = vpop.f32.mrb[2].mxu0 }
 0x166   : > { %v1053_v12 = vpop.f32.mrb[3].mxu0 }
 0x167   : > { %v1054_v13 = vadd.f32 %v1053_v12, %v1052_v11 }
 0x169   : > { %v632_v14 = vpack.c.bf16 %v1054_v13, %v1051_v10 }
 0x16b   : > { %v1055_v15 = vpop.f32.mrb[4].mxu0  ;;  %1129 = vmatprep.mubr.bf16.mxu1 %v632_v14 }
 0x16c   : > { %v1056_v16 = vpop.f32.mrb[5].mxu0 }
 0x16d   : > { %v1057_v17 = vadd.f32 %v1056_v16, %v1055_v15  ;;  %v1058_v18 = vpop.f32.mrb[6].mxu0 }
 0x16e   : > { %v1059_v19 = vpop.f32.mrb[7].mxu0 }
 0x16f   : > { %v1060_v20 = vadd.f32 %v1059_v19, %v1058_v18 }
 0x171   : > { %v633_v21 = vpack.c.bf16 %v1060_v20, %v1057_v17 }
 0x173   : > { %v1061_v22 = vpop.f32.mrb[8].mxu0  ;;  %1130 = vmatmul.mubr.bf16.vlgmr.msra.gmra.mrb[0].mxu1 %v633_v21 }
 0x174   : > { %v1062_v23 = vpop.f32.mrb[9].mxu0 }
 0x175   : > { %v1063_v24 = vadd.f32 %v1062_v23, %v1061_v22  ;;  %v1064_v25 = vpop.f32.mrb[10].mxu0 }
 0x176   : > { %v1065_v26 = vpop.f32.mrb[11].mxu0 }
 0x177   : > { %v1066_v27 = vadd.f32 %v1065_v26, %v1064_v25 }
 0x179   : > { %v634_v28 = vpack.c.bf16 %v1066_v27, %v1063_v24 }
 0x17b   : > { %v1067_v29 = vpop.f32.mrb[12].mxu0  ;;  %1133 = vmatprep.mubr.bf16.mxu1 %v634_v28 }
 0x17c   : > { %v1068_v30 = vpop.f32.mrb[13].mxu0 }
 0x17d   : > { %v1069_v31 = vadd.f32 %v1068_v30, %v1067_v29  ;;  %v1070_v32 = vpop.f32.mrb[14].mxu0 }
 0x17e   : > { %v1071_v33 = vpop.f32.mrb[15].mxu0 }
 0x17f   : > { %v1072_v34 = vadd.f32 %v1071_v33, %v1070_v32 }
 0x181   : > { %v635_v35 = vpack.c.bf16 %v1072_v34, %v1069_v31 }
 0x183   : > { %v1073_v36 = vpop.f32.mrb[16].mxu0  ;;  %1134 = vmatmul.mubr.bf16.gmra.mrb[4].mxu1 %v635_v35 }
 0x184   : > { %v1074_v37 = vpop.f32.mrb[17].mxu0 }
 0x185   : > { %v1075_v38 = vadd.f32 %v1074_v37, %v1073_v36  ;;  %v1076_v39 = vpop.f32.mrb[18].mxu0 }
 0x186   : > { %v1077_v40 = vpop.f32.mrb[19].mxu0 }
 0x187   : > { %v1078_v41 = vadd.f32 %v1077_v40, %v1076_v39 }
 0x189   : > { %v636_v42 = vpack.c.bf16 %v1078_v41, %v1075_v38 }
 0x18b   : > { %v1079_v43 = vpop.f32.mrb[20].mxu0  ;;  %1137 = vmatprep.mubr.bf16.mxu1 %v636_v42 }
 0x18c   : > { %v1080_v44 = vpop.f32.mrb[21].mxu0 }
 0x18d   : > { %v1081_v45 = vadd.f32 %v1080_v44, %v1079_v43  ;;  %v1082_v46 = vpop.f32.mrb[22].mxu0 }
 0x18e   : > { %v1083_v47 = vpop.f32.mrb[23].mxu0 }
 0x18f   : > { %v1084_v48 = vadd.f32 %v1083_v47, %v1082_v46 }
 0x191   : > { %v637_v49 = vpack.c.bf16 %v1084_v48, %v1081_v45 }
 0x193   : > { %v1085_v50 = vpop.f32.mrb[24].mxu0  ;;  %1138 = vmatmul.mubr.bf16.gmra.mrb[8].mxu1 %v637_v49 }
 0x194   : > { %v1086_v51 = vpop.f32.mrb[25].mxu0 }
 0x195   : > { %v1087_v52 = vadd.f32 %v1086_v51, %v1085_v50  ;;  %v1088_v53 = vpop.f32.mrb[26].mxu0 }
 0x196   : > { %v1089_v54 = vpop.f32.mrb[27].mxu0 }
 0x197   : > { %v1090_v55 = vadd.f32 %v1089_v54, %v1088_v53 }
 0x199   : > { %v638_v56 = vpack.c.bf16 %v1090_v55, %v1087_v52 }
 0x19b   : > { %v1091_v57 = vpop.f32.mrb[28].mxu0  ;;  %1141 = vmatprep.mubr.bf16.mxu1 %v638_v56 }
 0x19c   : > { %v1092_v58 = vpop.f32.mrb[29].mxu0 }
 0x19d   : > { %v1093_v59 = vadd.f32 %v1092_v58, %v1091_v57  ;;  %v1094_v60 = vpop.f32.mrb[30].mxu0 }
 0x19e   : > { %v1095_v61 = vpop.f32.mrb[31].mxu0 }
 0x19f   : > { %v1096_v62 = vadd.f32 %v1095_v61, %v1094_v60 }
 0x1a1   : > { %v639_v63 = vpack.c.bf16 %v1096_v62, %v1093_v59 }
 0x1a3   : > { %1142 = vmatmul.mubr.bf16.gmra.mrb[12].mxu1 %v639_v63 }
 0x246   : > { %v1131_v1 = vpop.f32.mrb[0].mxu1 }
 0x247   : > { %vm804_vm0 = vcmp.gt.f32.partialorder %v1131_v1, 0.0  ;;  %v821_v2 = vmul.f32 %v1131_v1, %v1705_v0  ;;  %v738_v3 = vpop.f32.mrb[1].mxu1 }
 0x248   : > { %vm802_vm1 = vcmp.gt.f32.partialorder %v738_v3, 0.0  ;;  %v819_v4 = vmul.f32 %v1705_v0, %v738_v3  ;;  %v1132_v5 = vpop.f32.mrb[2].mxu1 }
 0x249   : > { %v837_v6 = vsel %vm804_vm0, %v1131_v1, %v821_v2  ;;  %vm805_vm2 = vcmp.gt.f32.partialorder %v1132_v5, 0.0  ;;  %v822_v7 = vmul.f32 %v1132_v5, %v1705_v0  ;;  %v741_v8 = vpop.f32.mrb[3].mxu1 }
 0x24a   : > { %853 = vst [vmem:[%s1710_s28 + $0x10] sm:$0xff] %v837_v6  ;;  %v835_v9 = vsel %vm802_vm1, %v738_v3, %v819_v4  ;;  %vm803_vm3 = vcmp.gt.f32.partialorder %v741_v8, 0.0  ;;  %v820_v10 = vmul.f32 %v1705_v0, %v741_v8 }
 0x24b   : > { %851 = vst [vmem:[%s1710_s28] sm:$0xff] %v835_v9  ;;  %v838_v11 = vsel %vm805_vm2, %v1132_v5, %v822_v7 }
 0x24c   : > { %854 = vst [vmem:[%s1710_s28 + $0x18] sm:$0xff] %v838_v11  ;;  %v836_v12 = vsel %vm803_vm3, %v741_v8, %v820_v10 }
 0x24d   : > { %852 = vst [vmem:[%s1710_s28 + $0x8] sm:$0xff] %v836_v12 }
 0x256   : > { %v1135_v13 = vpop.f32.mrb[4].mxu1 }
 0x257   : > { %vm808_vm4 = vcmp.gt.f32.partialorder %v1135_v13, 0.0  ;;  %v825_v14 = vmul.f32 %v1135_v13, %v1705_v0  ;;  %v754_v15 = vpop.f32.mrb[5].mxu1 }
 0x258   : > { %vm806_vm5 = vcmp.gt.f32.partialorder %v754_v15, 0.0  ;;  %v823_v16 = vmul.f32 %v1705_v0, %v754_v15  ;;  %v1136_v17 = vpop.f32.mrb[6].mxu1 }
 0x259   : > { %v841_v18 = vsel %vm808_vm4, %v1135_v13, %v825_v14  ;;  %vm809_vm6 = vcmp.gt.f32.partialorder %v1136_v17, 0.0  ;;  %v826_v19 = vmul.f32 %v1136_v17, %v1705_v0  ;;  %v757_v20 = vpop.f32.mrb[7].mxu1 }
 0x25a   : > { %857 = vst [vmem:[%s1710_s28 + $0x30] sm:$0xff] %v841_v18  ;;  %v839_v21 = vsel %vm806_vm5, %v754_v15, %v823_v16  ;;  %vm807_vm7 = vcmp.gt.f32.partialorder %v757_v20, 0.0  ;;  %v824_v22 = vmul.f32 %v1705_v0, %v757_v20 }
 0x25b   : > { %855 = vst [vmem:[%s1710_s28 + $0x20] sm:$0xff] %v839_v21  ;;  %v842_v23 = vsel %vm809_vm6, %v1136_v17, %v826_v19 }
 0x25c   : > { %858 = vst [vmem:[%s1710_s28 + $0x38] sm:$0xff] %v842_v23  ;;  %v840_v24 = vsel %vm807_vm7, %v757_v20, %v824_v22 }
 0x25d   : > { %856 = vst [vmem:[%s1710_s28 + $0x28] sm:$0xff] %v840_v24 }
 0x266   : > { %v1139_v25 = vpop.f32.mrb[8].mxu1 }
 0x267   : > { %vm812_vm8 = vcmp.gt.f32.partialorder %v1139_v25, 0.0  ;;  %v829_v26 = vmul.f32 %v1139_v25, %v1705_v0  ;;  %v770_v27 = vpop.f32.mrb[9].mxu1 }
 0x268   : > { %vm810_vm9 = vcmp.gt.f32.partialorder %v770_v27, 0.0  ;;  %v827_v28 = vmul.f32 %v1705_v0, %v770_v27  ;;  %v1140_v29 = vpop.f32.mrb[10].mxu1 }
 0x269   : > { %v845_v30 = vsel %vm812_vm8, %v1139_v25, %v829_v26  ;;  %vm813_vm10 = vcmp.gt.f32.partialorder %v1140_v29, 0.0  ;;  %v830_v31 = vmul.f32 %v1140_v29, %v1705_v0  ;;  %v773_v32 = vpop.f32.mrb[11].mxu1 }
 0x26a   : > { %861 = vst [vmem:[%s1710_s28 + $0x50] sm:$0xff] %v845_v30  ;;  %v843_v33 = vsel %vm810_vm9, %v770_v27, %v827_v28  ;;  %vm811_vm11 = vcmp.gt.f32.partialorder %v773_v32, 0.0  ;;  %v828_v34 = vmul.f32 %v1705_v0, %v773_v32 }
 0x26b   : > { %859 = vst [vmem:[%s1710_s28 + $0x40] sm:$0xff] %v843_v33  ;;  %v846_v35 = vsel %vm813_vm10, %v1140_v29, %v830_v31 }
 0x26c   : > { %862 = vst [vmem:[%s1710_s28 + $0x58] sm:$0xff] %v846_v35  ;;  %v844_v36 = vsel %vm811_vm11, %v773_v32, %v828_v34 }
 0x26d   : > { %860 = vst [vmem:[%s1710_s28 + $0x48] sm:$0xff] %v844_v36 }
 0x276   : > { %v1143_v37 = vpop.f32.mrb[12].mxu1 }
 0x277   : > { %vm816_vm12 = vcmp.gt.f32.partialorder %v1143_v37, 0.0  ;;  %v833_v38 = vmul.f32 %v1143_v37, %v1705_v0  ;;  %v786_v39 = vpop.f32.mrb[13].mxu1 }
 0x278   : > { %vm814_vm13 = vcmp.gt.f32.partialorder %v786_v39, 0.0  ;;  %v831_v40 = vmul.f32 %v1705_v0, %v786_v39  ;;  %v1144_v41 = vpop.f32.mrb[14].mxu1 }
 0x279   : > { %v849_v42 = vsel %vm816_vm12, %v1143_v37, %v833_v38  ;;  %vm817_vm14 = vcmp.gt.f32.partialorder %v1144_v41, 0.0  ;;  %v834_v43 = vmul.f32 %v1144_v41, %v1705_v0  ;;  %v789_v44 = vpop.f32.mrb[15].mxu1 }
 0x27a   : > { %865 = vst [vmem:[%s1710_s28 + $0x70] sm:$0xff] %v849_v42  ;;  %v847_v45 = vsel %vm814_vm13, %v786_v39, %v831_v40  ;;  %vm815_vm15 = vcmp.gt.f32.partialorder %v789_v44, 0.0  ;;  %v832_v46 = vmul.f32 %v1705_v0, %v789_v44 }
 0x27b   : > { %863 = vst [vmem:[%s1710_s28 + $0x60] sm:$0xff] %v847_v45  ;;  %v850_v47 = vsel %vm817_vm14, %v1144_v41, %v834_v43 }
 0x27c   : > { %866 = vst [vmem:[%s1710_s28 + $0x78] sm:$0xff] %v850_v47  ;;  %v848_v48 = vsel %vm815_vm15, %v789_v44, %v832_v46 }
 0x27d   : > { %864 = vst [vmem:[%s1710_s28 + $0x68] sm:$0xff] %v848_v48 }
 0x27e   : > { %1357 = shalt.err (!%p1354_p11)
}
 0x27f   : > { %s1358_s15 = scalar_lea.hbm %s1743_s30, 2048  ;;  %s1362_s16 = scalar_lea.hbm %s1801_s4, 4096 }
 0x280   : > { %p1359_p0 = scmp.ne.s32.totalorder %s1743_s30, %s1358_s15  ;;  %p1363_p6 = scmp.lt.u32.totalorder %s1743_s30, %s1801_s4 }
 0x281   : > { %p1364_p7 = scmp.lt.u32.totalorder %s1362_s16, %s1358_s15  ;;  %p1366_p8 = scmp.lt.u32.totalorder %s1358_s15, %s1743_s30 }
 0x282   : > { %p1360_p4 = pnand %p1359_p0, %p1816_p12 }
 0x283   : > { %p1365_p2 = por %p1364_p7, %p1363_p6 }
 0x284   : > { %p1361_p13 = pneg %p1360_p4 }
 0x285   : > { %p1367_p1 = por %p1366_p8, %p1365_p2 }
 0x287   : > { %p1368_p10 = pnand %p1367_p1, %p1361_p13 }
 0x289   : > { %1371 = shalt.err (!%p1368_p10)
}
 0x28a   : > { %s1440_s28 = smov 128   ;;  %s1441_s11 = smov 8  }
 0x28b   : > { %1155 = dma.vmem_to_hbm [thread:$0]  (%p1816_p12), %s1745_s12, 2048, %s1743_s30, %s868_s8, %s1440_s28, %s1440_s28, %s1441_s11  }
 0x28c PF: > { %s896_s20 = sand.u32 1, %s1410_s17   ;;  %p1817_p3 = scmp.ne.s32.totalorder %s1809_s27, 0 }
 0x28d   : > { %p1818_p5 = scmp.ge.s32.totalorder %s1430_s22, 2  ;;  %s897_s13 = scalar_lea.sflag [#allocation6], %s896_s20 }
 0x28f   : > { %p1169_p9 = pnand %p1818_p5, %p1817_p3 }
 0x291   : > { %1405 = dma.done.wait (!%p1169_p9), %s897_s13, 2048  }
 0x292   : > { %1407 = vsyncadd (!%p1169_p9), %s897_s13, 4294965248  ;;  %s22_s22 = sadd.s32 1, %s1430_s22   ;;  %s1819_s17 = smov %s1414_s18 }
 0x293   : > { %p19_p11 = scmp.ge.s32.totalorder %s22_s22, 4   ;;  %s1820_s18 = smov %s1418_s19 }
 0x294   : > { %s1821_s19 = smov %s1612_s3  ;;  %s1822_s20 = smov %s1426_s21 }
 0x295   : > { %s1823_s21 = smov %s1825_s23  ;;  %21 = sbr.rel (!%p19_p11) target bundleno = 9 (0x9), region = 98 }
 0x29c   :  { %902 = vsyncpa [#allocation5], 1 }
 0x29d   :  { %904 = vsyncpa [#allocation5 + $0x1], 1 }
 0x29e   :  { %905 = vsyncpa [#allocation8], 1 }
 0x29f   :  { %906 = vsyncpa [#allocation6], 1 }
 0x2a0   :  { %908 = vsyncpa [#allocation6 + $0x1], 1 }

</bundles_post_ra>
